<compile_context>
chip_gen: v7x
topology: tpu7x:2x2x1
jax: 0.10.0
libtpu: 0.0.40
codegen_flags: <defaults>
</compile_context>

<pallas_src>
import jax
import jax.numpy as jnp
from jax.experimental import pallas as pl
from jax.experimental.pallas import tpu as pltpu


def _round_up(x, m):
    return (x + m - 1) // m * m


def qnet_kernel(x_ref, w_ref, b_ref, o_ref):
    # x_ref: (TB, dmax)   w_ref: (3, dmax, dmax)   b_ref: (3, dmax)   o_ref: (TB, dmax)
    x = x_ref[...]
    bias = b_ref[...]                                   # (3, dmax), tiny

    h = jnp.dot(x, w_ref[0], preferred_element_type=jnp.float32) + bias[0:1, :]
    h = jnp.maximum(h, 0.0)                             # relu (f32 epilogue)
    h = jnp.dot(h, w_ref[1], preferred_element_type=jnp.float32) + bias[1:2, :]
    h = jnp.maximum(h, 0.0)                             # relu
    out = jnp.dot(h, w_ref[2], preferred_element_type=jnp.float32) + bias[2:3, :]
    o_ref[...] = out.astype(o_ref.dtype)


def linear_qnet_forward(x, params, *, max_block_batch=1024):
    """x: (B, input_size) f32; params: dict w1,b1,w2,b2,w3,b3 (W: (in, out), b: (1, out))."""
    w1, b1, w2, b2, w3, b3 = (params[k] for k in ("w1", "b1", "w2", "b2", "w3", "b3"))
    in_size, h1 = w1.shape
    h2 = w2.shape[1]
    out_size = w3.shape[1]

    # Pad every feature dim to a lane-aligned common width and pack weights/biases.
    dmax = max(_round_up(d, 128) for d in (in_size, h1, h2, out_size))

    def pad_w(w):
        return jnp.zeros((dmax, dmax), w.dtype).at[: w.shape[0], : w.shape[1]].set(w)

    def pad_b(b):
        return jnp.zeros((dmax,), b.dtype).at[: b.shape[-1]].set(b.reshape(-1))

    w_pack = jnp.stack([pad_w(w1), pad_w(w2), pad_w(w3)])   # (3, dmax, dmax)
    b_pack = jnp.stack([pad_b(b1), pad_b(b2), pad_b(b3)])   # (3, dmax)

    # Batch tiling: pad B to a multiple of the batch tile so every block is full.
    B = x.shape[0]
    tb = min(max_block_batch, _round_up(B, 8))
    b_pad = _round_up(B, tb)
    x_p = jnp.zeros((b_pad, dmax), x.dtype).at[:B, :in_size].set(x)

    # VMEM budget estimate (resident weights + double-buffered x/out tiles) + headroom.
    est = (3 * dmax * dmax + 3 * dmax) * 4 + 2 * 2 * tb * dmax * 4 + (4 << 20)
    vmem_limit = int(min(max(est, 16 << 20), 48 << 20))

    out_padded = pl.pallas_call(
        qnet_kernel,
        out_shape=jax.ShapeDtypeStruct((b_pad, dmax), x.dtype),
        grid_spec=pltpu.PrefetchScalarGridSpec(
            num_scalar_prefetch=0,
            grid=(b_pad // tb,),
            in_specs=[
                pl.BlockSpec((tb, dmax), lambda i: (i, 0)),          # x tile per step
                pl.BlockSpec((3, dmax, dmax), lambda i: (0, 0, 0)),  # weights resident
                pl.BlockSpec((3, dmax), lambda i: (0, 0)),           # biases resident
            ],
            out_specs=pl.BlockSpec((tb, dmax), lambda i: (i, 0)),
        ),
        compiler_params=pltpu.CompilerParams(
            dimension_semantics=("parallel",),
            vmem_limit_bytes=vmem_limit,
        ),
    )(x_p, w_pack, b_pack)

    return out_padded[:B, :out_size]


def init_params(key, input_size, hidden1, hidden2, output_size):
    """Deterministic init mimicking nn.Linear's U(-1/sqrt(fan_in), 1/sqrt(fan_in))."""
    ks = jax.random.split(key, 6)

    def lin(kw, kb, fan_in, fan_out):
        bound = 1.0 / jnp.sqrt(fan_in)
        w = jax.random.uniform(kw, (fan_in, fan_out), jnp.float32, -bound, bound)
        b = jax.random.uniform(kb, (1, fan_out), jnp.float32, -bound, bound)
        return w, b

    w1, b1 = lin(ks[0], ks[1], input_size, hidden1)
    w2, b2 = lin(ks[2], ks[3], hidden1, hidden2)
    w3, b3 = lin(ks[4], ks[5], hidden2, output_size)
    return {"w1": w1, "b1": b1, "w2": w2, "b2": b2, "w3": w3, "b3": b3}


def reference_forward(x, p):
    h1 = jnp.maximum(x @ p["w1"] + p["b1"], 0.0)
    h2 = jnp.maximum(h1 @ p["w2"] + p["b2"], 0.0)
    return h2 @ p["w3"] + p["b3"]


if __name__ == "__main__":
    # Small shapes consistent with the module: Linear_QNet(input_size, h1, h2, output_size)
    batch, input_size, hidden1, hidden2, output_size = 8, 16, 64, 32, 4

    key = jax.random.PRNGKey(0)
    k_x, k_p = jax.random.split(key)
    x = jax.random.normal(k_x, (batch, input_size), jnp.float32)
    params = init_params(k_p, input_size, hidden1, hidden2, output_size)

    out = linear_qnet_forward(x, params)
    out = jax.block_until_ready(out)

    ref = reference_forward(x, params)
    assert out.shape == (batch, output_size)
    assert jnp.allclose(out, ref, atol=1e-5, rtol=1e-5)

    print("KERNEL_OK")
</pallas_src>

<mosaic_0001>
module attributes {stable_mosaic.version = 11 : i64} {
  func.func @qnet_kernel(%arg0: i32, %arg1: memref<8x128xf32, #tpu.memory_space<vmem>>, %arg2: memref<3x128x128xf32, #tpu.memory_space<vmem>>, %arg3: memref<3x128xf32, #tpu.memory_space<vmem>>, %arg4: memref<8x128xf32, #tpu.memory_space<vmem>>) attributes {dimension_semantics = [#tpu.dimension_semantics<parallel>], iteration_bounds = array<i64: 1>, scalar_prefetch = 0 : i64, scratch_operands = 0 : i64, tpu.core_type = #tpu.core_type<tc>, window_params = [{transform_indices = @transform_0, window_bounds = array<i64: 8, 128>}, {pipeline_mode = #tpu.pipeline_mode<synchronous>, transform_indices = @transform_1, window_bounds = array<i64: 3, 128, 128>}, {pipeline_mode = #tpu.pipeline_mode<synchronous>, transform_indices = @transform_2, window_bounds = array<i64: 3, 128>}, {transform_indices = @transform_3, window_bounds = array<i64: 8, 128>}]} {
    %c0 = arith.constant 0 : index
    %c0_0 = arith.constant 0 : index
    %0 = vector.load %arg1[%c0, %c0_0] : memref<8x128xf32, #tpu.memory_space<vmem>>, vector<8x128xf32>
    %c0_1 = arith.constant 0 : index
    %c0_2 = arith.constant 0 : index
    %1 = vector.load %arg3[%c0_1, %c0_2] : memref<3x128xf32, #tpu.memory_space<vmem>>, vector<3x128xf32>
    %c0_3 = arith.constant 0 : index
    %c0_4 = arith.constant 0 : index
    %c0_5 = arith.constant 0 : index
    %2 = vector.load %arg2[%c0_3, %c0_4, %c0_5] : memref<3x128x128xf32, #tpu.memory_space<vmem>>, vector<1x128x128xf32>
    %3 = vector.shape_cast %2 : vector<1x128x128xf32> to vector<128x128xf32>
    %cst = arith.constant dense<0.000000e+00> : vector<8x128xf32>
    %4 = tpu.matmul %0, %3, %cst {dimension_numbers = #tpu.dot_dimension_numbers<[1], [0], [0], [1], [0, 0, 1, 1], [], []>} : vector<8x128xf32>, vector<128x128xf32>, vector<8x128xf32> -> vector<8x128xf32>
    %5 = vector.extract_strided_slice %1 {offsets = [0, 0], sizes = [1, 128], strides = [1, 1]} : vector<3x128xf32> to vector<1x128xf32>
    %6 = vector.broadcast %5 : vector<1x128xf32> to vector<8x128xf32>
    %7 = arith.addf %4, %6 : vector<8x128xf32>
    %cst_6 = arith.constant 0.000000e+00 : f32
    %8 = vector.broadcast %cst_6 : f32 to vector<8x128xf32>
    %9 = arith.maximumf %7, %8 : vector<8x128xf32>
    %c1 = arith.constant 1 : index
    %c0_7 = arith.constant 0 : index
    %c0_8 = arith.constant 0 : index
    %10 = vector.load %arg2[%c1, %c0_7, %c0_8] : memref<3x128x128xf32, #tpu.memory_space<vmem>>, vector<1x128x128xf32>
    %11 = vector.shape_cast %10 : vector<1x128x128xf32> to vector<128x128xf32>
    %cst_9 = arith.constant dense<0.000000e+00> : vector<8x128xf32>
    %12 = tpu.matmul %9, %11, %cst_9 {dimension_numbers = #tpu.dot_dimension_numbers<[1], [0], [0], [1], [0, 0, 1, 1], [], []>} : vector<8x128xf32>, vector<128x128xf32>, vector<8x128xf32> -> vector<8x128xf32>
    %13 = vector.extract_strided_slice %1 {offsets = [1, 0], sizes = [1, 128], strides = [1, 1]} : vector<3x128xf32> to vector<1x128xf32>
    %14 = vector.broadcast %13 : vector<1x128xf32> to vector<8x128xf32>
    %15 = arith.addf %12, %14 : vector<8x128xf32>
    %cst_10 = arith.constant 0.000000e+00 : f32
    %16 = vector.broadcast %cst_10 : f32 to vector<8x128xf32>
    %17 = arith.maximumf %15, %16 : vector<8x128xf32>
    %c2 = arith.constant 2 : index
    %c0_11 = arith.constant 0 : index
    %c0_12 = arith.constant 0 : index
    %18 = vector.load %arg2[%c2, %c0_11, %c0_12] : memref<3x128x128xf32, #tpu.memory_space<vmem>>, vector<1x128x128xf32>
    %19 = vector.shape_cast %18 : vector<1x128x128xf32> to vector<128x128xf32>
    %cst_13 = arith.constant dense<0.000000e+00> : vector<8x128xf32>
    %20 = tpu.matmul %17, %19, %cst_13 {dimension_numbers = #tpu.dot_dimension_numbers<[1], [0], [0], [1], [0, 0, 1, 1], [], []>} : vector<8x128xf32>, vector<128x128xf32>, vector<8x128xf32> -> vector<8x128xf32>
    %21 = vector.extract_strided_slice %1 {offsets = [2, 0], sizes = [1, 128], strides = [1, 1]} : vector<3x128xf32> to vector<1x128xf32>
    %22 = vector.broadcast %21 : vector<1x128xf32> to vector<8x128xf32>
    %23 = arith.addf %20, %22 : vector<8x128xf32>
    %c0_14 = arith.constant 0 : index
    %c0_15 = arith.constant 0 : index
    %24 = vector.load %arg4[%c0_14, %c0_15] : memref<8x128xf32, #tpu.memory_space<vmem>>, vector<8x128xf32>
    tpu.vector_store %arg4[%c0_14, %c0_15], %23 {strides = array<i32>} : memref<8x128xf32, #tpu.memory_space<vmem>>, vector<8x128xf32>,
    return
  }
  func.func @transform_0(%arg0: i32) -> (i32, i32) {
    %c0_i32 = arith.constant 0 : i32
    %c0_i32_0 = arith.constant 0 : i32
    return %arg0, %c0_i32 : i32, i32
  }
  func.func @transform_1(%arg0: i32) -> (i32, i32, i32) {
    %c0_i32 = arith.constant 0 : i32
    %c0_i32_0 = arith.constant 0 : i32
    %c0_i32_1 = arith.constant 0 : i32
    %c0_i32_2 = arith.constant 0 : i32
    return %c0_i32, %c0_i32_0, %c0_i32_1 : i32, i32, i32
  }
  func.func @transform_2(%arg0: i32) -> (i32, i32) {
    %c0_i32 = arith.constant 0 : i32
    %c0_i32_0 = arith.constant 0 : i32
    %c0_i32_1 = arith.constant 0 : i32
    return %c0_i32, %c0_i32_0 : i32, i32
  }
  func.func @transform_3(%arg0: i32) -> (i32, i32) {
    %c0_i32 = arith.constant 0 : i32
    %c0_i32_0 = arith.constant 0 : i32
    return %arg0, %c0_i32 : i32, i32
  }
}

</mosaic_0001>

<bundles_post_ra>
// kernel: tpu_custom_call.1
= control target key start
LH: loop header
LB: loop body
LE: loop exit
PB: predicated region body
PF: predicated region fallthrough
CT: control target
= control target key end

     0   :  { %8 = vsyncpa [#allocation3], 0  ;;  %s746_s0 = inlined_call_operand.hbm [shape: f32[8,128], index: 0, kind: input, shape index: {}]   ;;  %s747_s1 = inlined_call_operand.hbm [shape: f32[3,128,128], index: 1, kind: input, shape index: {}]   ;;  %s748_s2 = inlined_call_operand.vmem [shape: f32[3,128], index: 2, kind: input, shape index: {}]   ;;  %s749_s3 = inlined_call_operand.hbm [shape: f32[8,128], index: 3, kind: output, shape index: {}]  }
   0x1   :  { %9 = vsyncpa [#allocation6], 0 }
   0x2   :  { %10 = vsyncpa [#allocation4], 0  ;;  %s642_s12 = smov [#allocation2]   ;;  %s643_s14 = smov [#allocation5]  }
   0x3   :  { %s17_s13 = sshll.u32 %s642_s12, 4  ;;  %s26_s15 = sshll.u32 %s643_s14, 4  ;;  %s18_s13 = int_to_ptr.vmem [resolvable:$true] %s17_s13  ;;  %s670_s15 = int_to_ptr.vmem [resolvable:$true] %s26_s15 }
   0x4   :  { %s570_s18 = scalar_lea.hbm %s746_s0, 128 }
   0x5   :  { %p571_p0 = scmp.ne.s32.totalorder %s746_s0, %s570_s18  ;;  %p574_p1 = scmp.lt.u32.totalorder %s570_s18, %s746_s0 }
   0x7   :  { %p576_p2 = pnand %p574_p1, %p571_p0 }
   0x9   :  { %579 = shalt.err (!%p576_p2)
}
   0xa   :  { %s580_s23 = scalar_lea.vmem %s18_s13, 128  ;;  %p585_p4 = scmp.lt.s32.totalorder %s18_s13, %s18_s13 }
   0xb   :  { %p581_p3 = scmp.ne.s32.totalorder %s18_s13, %s580_s23  ;;  %p586_p5 = scmp.lt.s32.totalorder %s580_s23, %s580_s23 }
   0xd   :  { %p587_p6 = por %p586_p5, %p585_p4 }
   0xf   :  { %p588_p7 = pnand %p587_p6, %p581_p3 }
  0x11   :  { %591 = shalt.err (!%p588_p7)
}
  0x12   :  { %20 = dma.hbm_to_vmem [thread:$0]  %s746_s0, 128, %s18_s13, [#allocation3]  }
  0x13   :  { %s592_s28 = scalar_lea.hbm %s747_s1, 6144 }
  0x14   :  { %p593_p8 = scmp.ne.s32.totalorder %s747_s1, %s592_s28  ;;  %p596_p9 = scmp.lt.u32.totalorder %s592_s28, %s747_s1 }
  0x16   :  { %p598_p10 = pnand %p596_p9, %p593_p8 }
  0x18   :  { %601 = shalt.err (!%p598_p10)
}
  0x19   :  { %s602_s6 = scalar_lea.vmem %s670_s15, 6144  ;;  %p607_p12 = scmp.lt.s32.totalorder %s670_s15, %s670_s15 }
  0x1a   :  { %p603_p11 = scmp.ne.s32.totalorder %s670_s15, %s602_s6  ;;  %p608_p13 = scmp.lt.s32.totalorder %s602_s6, %s602_s6 }
  0x1c   :  { %p609_p0 = por %p608_p13, %p607_p12 }
  0x1e   :  { %p610_p1 = pnand %p609_p0, %p603_p11 }
  0x20   :  { %613 = shalt.err (!%p610_p1)
}
  0x21   :  { %s644_s0 = smov 128   ;;  %s645_s7 = smov 8  }
  0x22   :  { %32 = dma.hbm_to_vmem [thread:$0]  %s747_s1, 6144, %s670_s15, [#allocation6], %s644_s0, %s644_s0, %s645_s7  }
  0x23   :  { %636 = dma.done.wait [#allocation3], 128  }
  0x24   :  { %637 = vsyncadd [#allocation3], 4294967168 }
  0x25   :  { %638 = dma.done.wait [#allocation6], 6144  }
  0x26   :  { %639 = vsyncadd [#allocation6], 4294961152  ;;  %v646_v0 = vmov 0.0|0.0   ;;  %vm647_vm0 = vmmov 0   ;;  %v648_v1 = vmov 0.0   ;;  %v43_v2 = vld [vmem:[#allocation5] sm:$0xff] }
  0x27   :  { %490 = vmatprep.subr.bf16.mxu0 %v646_v0  ;;  %417 = vmatprep.mubr.msk.f32.mxu0 %vm647_vm0, %v648_v1  ;;  %v44_v3 = vld [vmem:[#allocation5 + $0x8] sm:$0xff]  ;;  %v45_v4 = vld [vmem:[#allocation5 + $0x10] sm:$0xff]  ;;  %v46_v6 = vld [vmem:[#allocation5 + $0x18] sm:$0xff] }
  0x28   :  { %514 = vmatprep.subr.bf16.mxu1 %v646_v0  ;;  %452 = vmatprep.mubr.msk.f32.mxu1 %vm647_vm0, %v648_v1  ;;  %v491_v5 = vpack.c.bf16 %v44_v3, %v43_v2  ;;  %v494_v7 = vpack.c.bf16 %v46_v6, %v45_v4  ;;  %v47_v8 = vld [vmem:[#allocation5 + $0x20] sm:$0xff]  ;;  %v48_v9 = vld [vmem:[#allocation5 + $0x28] sm:$0xff]  ;;  %v137_v12 = vld [vmem:[#allocation5 + $0x90] sm:$0xff] }
  0x29   :  { %v135_v10 = vld [vmem:[#allocation5 + $0x80] sm:$0xff]  ;;  %v136_v11 = vld [vmem:[#allocation5 + $0x88] sm:$0xff]  ;;  %v138_v13 = vld [vmem:[#allocation5 + $0x98] sm:$0xff]  ;;  %v497_v14 = vpack.c.bf16 %v48_v9, %v47_v8  ;;  %v59_v9 = vlaneseq }
  0x2a   :  { %492 = vmatpush3.bf16.msra.mxu0 %v491_v5  ;;  %v515_v15 = vpack.c.bf16 %v136_v11, %v135_v10  ;;  %v49_v16 = vld [vmem:[#allocation5 + $0x30] sm:$0xff]  ;;  %v50_v17 = vld [vmem:[#allocation5 + $0x38] sm:$0xff]  ;;  %v518_v18 = vpack.c.bf16 %v138_v13, %v137_v12  ;;  %v139_v19 = vld [vmem:[#allocation5 + $0xa0] sm:$0xff] }
  0x2b   :  { %493 = vmatprep.subr.bf16.mxu0 %v646_v0  ;;  %v140_v20 = vld [vmem:[#allocation5 + $0xa8] sm:$0xff]  ;;  %v500_v21 = vpack.c.bf16 %v50_v17, %v49_v16  ;;  %v51_v22 = vld [vmem:[#allocation5 + $0x40] sm:$0xff]  ;;  %v141_v25 = vld [vmem:[#allocation5 + $0xb0] sm:$0xff]  ;;  %v60_v10 = vshrl.u32 %v59_v9, 7 }
  0x2c   :  { %516 = vmatpush3.bf16.msra.mxu1 %v515_v15  ;;  %v52_v23 = vld [vmem:[#allocation5 + $0x48] sm:$0xff]  ;;  %v521_v24 = vpack.c.bf16 %v140_v20, %v139_v19  ;;  %v142_v26 = vld [vmem:[#allocation5 + $0xb8] sm:$0xff]  ;;  %v53_v28 = vld [vmem:[#allocation5 + $0x50] sm:$0xff] }
  0x2d   :  { %517 = vmatprep.subr.bf16.mxu1 %v646_v0  ;;  %v503_v27 = vpack.c.bf16 %v52_v23, %v51_v22  ;;  %v54_v29 = vld [vmem:[#allocation5 + $0x58] sm:$0xff]  ;;  %v524_v30 = vpack.c.bf16 %v142_v26, %v141_v25  ;;  %v143_v31 = vld [vmem:[#allocation5 + $0xc0] sm:$0xff]  ;;  %v144_v32 = vld [vmem:[#allocation5 + $0xc8] sm:$0xff]  ;;  %v61_v11 = vsub.s32 0, %v60_v10  ;;  %v245_v26 = vsub.s32 2, %v60_v10 }
  0x2e   :  { %495 = vmatpush3.bf16.msra.mxu0 %v494_v7  ;;  %v506_v33 = vpack.c.bf16 %v54_v29, %v53_v28  ;;  %v55_v34 = vld [vmem:[#allocation5 + $0x60] sm:$0xff]  ;;  %v56_v35 = vld [vmem:[#allocation5 + $0x68] sm:$0xff]  ;;  %v527_v36 = vpack.c.bf16 %v144_v32, %v143_v31  ;;  %v145_v37 = vld [vmem:[#allocation5 + $0xd0] sm:$0xff] }
  0x2f   :  { %496 = vmatprep.subr.bf16.mxu0 %v646_v0  ;;  %v146_v38 = vld [vmem:[#allocation5 + $0xd8] sm:$0xff]  ;;  %v509_v39 = vpack.c.bf16 %v56_v35, %v55_v34  ;;  %v57_v40 = vld [vmem:[#allocation5 + $0x70] sm:$0xff]  ;;  %v147_v43 = vld [vmem:[#allocation5 + $0xe0] sm:$0xff] }
  0x30   :  { %519 = vmatpush3.bf16.msra.mxu1 %v518_v18  ;;  %v58_v41 = vld [vmem:[#allocation5 + $0x78] sm:$0xff]  ;;  %v530_v42 = vpack.c.bf16 %v146_v38, %v145_v37  ;;  %v148_v44 = vld [vmem:[#allocation5 + $0xe8] sm:$0xff]  ;;  %v149_v48 = vld [vmem:[#allocation5 + $0xf0] sm:$0xff] }
  0x31   :  { %520 = vmatprep.subr.bf16.mxu1 %v646_v0  ;;  %v512_v45 = vpack.c.bf16 %v58_v41, %v57_v40  ;;  %v533_v46 = vpack.c.bf16 %v148_v44, %v147_v43  ;;  %v41_v47 = vld [vmem:[#allocation2] sm:$0xff]  ;;  %v227_v51 = vld [vmem:[#allocation5 + $0x100] sm:$0xff]  ;;  %v228_v52 = vld [vmem:[#allocation5 + $0x108] sm:$0xff] }
  0x32   :  { %498 = vmatpush3.bf16.msra.mxu0 %v497_v14  ;;  %v150_v49 = vld [vmem:[#allocation5 + $0xf8] sm:$0xff]  ;;  %v229_v53 = vld [vmem:[#allocation5 + $0x110] sm:$0xff]  ;;  %v539_v54 = vpack.c.bf16 %v228_v52, %v227_v51  ;;  %v231_v57 = vld [vmem:[#allocation5 + $0x120] sm:$0xff] }
  0x33   :  { %499 = vmatprep.subr.bf16.mxu0 %v646_v0  ;;  %v536_v50 = vpack.c.bf16 %v150_v49, %v149_v48  ;;  %v230_v55 = vld [vmem:[#allocation5 + $0x118] sm:$0xff]  ;;  %v232_v58 = vld [vmem:[#allocation5 + $0x128] sm:$0xff]  ;;  %v233_v60 = vld [vmem:[#allocation5 + $0x130] sm:$0xff] }
  0x34   :  { %522 = vmatpush3.bf16.msra.mxu1 %v521_v24  ;;  %v542_v56 = vpack.c.bf16 %v230_v55, %v229_v53  ;;  %v545_v59 = vpack.c.bf16 %v232_v58, %v231_v57  ;;  %v234_v61 = vld [vmem:[#allocation5 + $0x138] sm:$0xff]  ;;  %v235_v63 = vld [vmem:[#allocation5 + $0x140] sm:$0xff]  ;;  %v237_v3 = vld [vmem:[#allocation5 + $0x150] sm:$0xff] }
  0x35   :  { %523 = vmatprep.subr.bf16.mxu1 %v646_v0  ;;  %v548_v62 = vpack.c.bf16 %v234_v61, %v233_v60  ;;  %v238_v4 = vld [vmem:[#allocation5 + $0x158] sm:$0xff]  ;;  %v239_v6 = vld [vmem:[#allocation5 + $0x160] sm:$0xff]  ;;  %v240_v7 = vld [vmem:[#allocation5 + $0x168] sm:$0xff] }
  0x36   :  { %501 = vmatpush3.bf16.msra.mxu0 %v500_v21  ;;  %v554_v5 = vpack.c.bf16 %v238_v4, %v237_v3  ;;  %v557_v8 = vpack.c.bf16 %v240_v7, %v239_v6  ;;  %v42_v12 = vld [vmem:[%s748_s2] sm:$0x7]  ;;  %v241_v18 = vld [vmem:[#allocation5 + $0x170] sm:$0xff]  ;;  %v153_v21 = vsub.s32 1, %v60_v10  ;;  %s649_s2 = smov [#allocation7]  }
  0x37   :  { %502 = vmatprep.subr.bf16.mxu0 %v646_v0  ;;  %v62_v13 = vrot.slane %v42_v12, %v61_v11  ;;  %v242_v19 = vld [vmem:[#allocation5 + $0x178] sm:$0xff]  ;;  %s324_s11 = sshll.u32 %s649_s2, 4  ;;  %s325_s11 = int_to_ptr.vmem [resolvable:$true] %s324_s11 }
  0x38   :  { %525 = vmatpush3.bf16.msra.mxu1 %v524_v30  ;;  %v560_v20 = vpack.c.bf16 %v242_v19, %v241_v18  ;;  %v154_v22 = vrot.slane %v42_v12, %v153_v21  ;;  %s614_s12 = scalar_lea.vmem %s325_s11, 128  ;;  %p619_p3 = scmp.lt.s32.totalorder %s325_s11, %s325_s11 }
  0x39   :  { %526 = vmatprep.subr.bf16.mxu1 %v646_v0  ;;  %p615_p2 = scmp.ne.s32.totalorder %s325_s11, %s614_s12  ;;  %p620_p4 = scmp.lt.s32.totalorder %s614_s12, %s614_s12 }
  0x3a   :  { %504 = vmatpush3.bf16.msra.mxu0 %v503_v27  ;;  %v246_v27 = vrot.slane %v42_v12, %v245_v26 }
  0x3b   :  { %505 = vmatprep.subr.bf16.mxu0 %v646_v0  ;;  %p621_p5 = por %p620_p4, %p619_p3 }
  0x3c   :  { %528 = vmatpush3.bf16.msra.mxu1 %v527_v36 }
  0x3d   :  { %529 = vmatprep.subr.bf16.mxu1 %v646_v0  ;;  %p622_p6 = pnand %p621_p5, %p615_p2 }
  0x3e   :  { %507 = vmatpush3.bf16.msra.mxu0 %v506_v33 }
  0x3f   :  { %508 = vmatprep.subr.bf16.mxu0 %v646_v0 }
  0x40   :  { %531 = vmatpush3.bf16.msra.mxu1 %v530_v42 }
  0x41   :  { %532 = vmatprep.subr.bf16.mxu1 %v646_v0 }
  0x42   :  { %510 = vmatpush3.bf16.msra.mxu0 %v509_v39 }
  0x43   :  { %511 = vmatprep.subr.bf16.mxu0 %v646_v0 }
  0x44   :  { %534 = vmatpush3.bf16.msra.mxu1 %v533_v46 }
  0x45   :  { %535 = vmatprep.subr.bf16.mxu1 %v646_v0 }
  0x46   :  { %513 = vmatpush3.bf16.msra.mxu0 %v512_v45 }
  0x47   :  { %538 = vmatprep.subr.bf16.mxu0 %v646_v0 }
  0x48   :  { %537 = vmatpush3.bf16.msra.mxu1 %v536_v50 }
  0x49   :  { %418 = vmatmul.mubr.f32.vlgmr.msra.gmra.mrb[0].mxu0 %v41_v47 }
  0x4a   :  { %487 = vmatprep.mubr.msk.f32.mxu0 %vm647_vm0, %v648_v1  ;;  %540 = vmatpush3.bf16.msra.mxu0 %v539_v54  ;;  %v236_v1 = vld [vmem:[#allocation5 + $0x148] sm:$0xff] }
  0x4b   :  { %541 = vmatprep.subr.bf16.mxu0 %v646_v0  ;;  %v551_v2 = vpack.c.bf16 %v236_v1, %v235_v63 }
  0x4e   :  { %543 = vmatpush3.bf16.msra.mxu0 %v542_v56 }
  0x4f   :  { %544 = vmatprep.subr.bf16.mxu0 %v646_v0 }
  0x52   :  { %546 = vmatpush3.bf16.msra.mxu0 %v545_v59 }
  0x53   :  { %547 = vmatprep.subr.bf16.mxu0 %v646_v0 }
  0x56   :  { %549 = vmatpush3.bf16.msra.mxu0 %v548_v62 }
  0x57   :  { %550 = vmatprep.subr.bf16.mxu0 %v646_v0 }
  0x5a   :  { %552 = vmatpush3.bf16.msra.mxu0 %v551_v2 }
  0x5b   :  { %553 = vmatprep.subr.bf16.mxu0 %v646_v0 }
  0x5e   :  { %555 = vmatpush3.bf16.msra.mxu0 %v554_v5 }
  0x5f   :  { %556 = vmatprep.subr.bf16.mxu0 %v646_v0 }
  0x62   :  { %558 = vmatpush3.bf16.msra.mxu0 %v557_v8 }
  0x63   :  { %559 = vmatprep.subr.bf16.mxu0 %v646_v0 }
  0x66   :  { %561 = vmatpush3.bf16.msra.mxu0 %v560_v20 }
 0x11c   :  { %v129_v14 = vpop.f32.mrb[0].mxu0 }
 0x11d   :  { %v130_v15 = vadd.f32 %v129_v14, %v62_v13  ;;  %v419_v16 = vpop.f32.mrb[1].mxu0 }
 0x11f   :  { %v133_v17 = vmax.f32 %v130_v15, 0.0 }
 0x121   :  { %453 = vmatmul.mubr.f32.vlgmr.msra.gmra.mrb[0].mxu1 %v133_v17 }
 0x1f4   :  { %v221_v0 = vpop.f32.mrb[0].mxu1 }
 0x1f5   :  { %v222_v23 = vadd.f32 %v221_v0, %v154_v22  ;;  %v454_v24 = vpop.f32.mrb[1].mxu1 }
 0x1f7   :  { %v225_v25 = vmax.f32 %v222_v23, 0.0 }
 0x1f9   :  { %488 = vmatmul.mubr.f32.vlgmr.msra.gmra.mrb[2].mxu0 %v225_v25 }
 0x2cc   :  { %v313_v28 = vpop.f32.mrb[2].mxu0 }
 0x2cd   :  { %v314_v29 = vadd.f32 %v313_v28, %v246_v27  ;;  %v489_v30 = vpop.f32.mrb[3].mxu0 }
 0x2cf   :  { %317 = vst [vmem:[#allocation7] sm:$0xff] %v314_v29 }
 0x2d0   :  { %625 = shalt.err (!%p622_p6)
}
 0x2d1   :  { %s626_s15 = scalar_lea.hbm %s749_s3, 128 }
 0x2d2   :  { %p627_p7 = scmp.ne.s32.totalorder %s749_s3, %s626_s15  ;;  %p630_p8 = scmp.lt.u32.totalorder %s626_s15, %s749_s3 }
 0x2d4   :  { %p632_p9 = pnand %p630_p8, %p627_p7 }
 0x2d6   :  { %635 = shalt.err (!%p632_p9)
}
 0x2d7   :  { %327 = dma.vmem_to_hbm [thread:$0]  %s325_s11, 128, %s749_s3, [#allocation4]  }
 0x2d8   :  { %640 = dma.done.wait [#allocation4], 128  }
 0x2d9   :  { %641 = vsyncadd [#allocation4], 4294967168 }
 0x2da   :  { %331 = vsyncpa [#allocation3], 1 }
 0x2db   :  { %332 = vsyncpa [#allocation6], 1 }
 0x2dc   :  { %333 = vsyncpa [#allocation4], 1 }

</bundles_post_ra>
